<compile_context>
chip_gen: v5e
topology: v5e:2x2
jax: 0.10.0
libtpu: 0.0.40
codegen_flags: <defaults>
</compile_context>

<pallas_src>
import jax
import jax.numpy as jnp
from jax import lax
from jax.experimental import pallas as pl
from jax.experimental.pallas import tpu as pltpu


# ---------------------------------------------------------------------------
# Forward pass: backbone stand-in + BarlowTwins projection head
# ---------------------------------------------------------------------------
def _forward_kernel(x_ref, wbb_ref, bbb_ref, w1_ref, b1_ref, w2_ref,
                    f_ref, z_ref):
    # x_ref: (B, C, H*W)  -- spatial mean pool == torch.mean(features, dim=[2,3])
    x = x_ref[...].astype(jnp.float32)
    pooled = jnp.mean(x, axis=-1)                                   # (B, C)
    feats = jnp.dot(pooled, wbb_ref[...].astype(jnp.float32),
                    preferred_element_type=jnp.float32) + bbb_ref[...]
    f_ref[...] = feats.astype(f_ref.dtype)                          # (B, F)

    h = jnp.maximum(
        jnp.dot(feats, w1_ref[...].astype(jnp.float32),
                preferred_element_type=jnp.float32) + b1_ref[...], 0.0)
    z = jnp.dot(h, w2_ref[...].astype(jnp.float32),
                preferred_element_type=jnp.float32)
    z_ref[...] = z.astype(z_ref.dtype)                              # (B, D)


def _make_forward_call(B, C, HW, F, Hd, D):
    vmem = pl.BlockSpec(memory_space=pltpu.MemorySpace.VMEM)
    flops = 2 * B * (C * HW + C * F + F * Hd + Hd * D)
    bytes_accessed = 4 * (B * C * HW + C * F + F + F * Hd + Hd + Hd * D
                          + B * F + B * D)
    return pl.pallas_call(
        _forward_kernel,
        out_shape=(jax.ShapeDtypeStruct((B, F), jnp.float32),
                   jax.ShapeDtypeStruct((B, D), jnp.float32)),
        in_specs=[vmem] * 6,
        out_specs=(vmem, vmem),
        cost_estimate=pl.CostEstimate(flops=flops, transcendentals=0,
                                      bytes_accessed=bytes_accessed),
    )


def barlow_twins_forward(x, params, training=True):
    """BarlowTwins.forward: projections when training, backbone feats in eval."""
    B, C, H, W = x.shape
    x3 = x.reshape(B, C, H * W)                 # lane-dense layout plumbing
    F = params["wbb"].shape[1]
    Hd = params["w1"].shape[1]
    D = params["w2"].shape[1]
    call = _make_forward_call(B, C, H * W, F, Hd, D)
    feats, z = call(x3, params["wbb"], params["bbb"], params["w1"],
                    params["b1"], params["w2"])
    return z if training else feats


# ---------------------------------------------------------------------------
# BarlowTwinsLoss
# ---------------------------------------------------------------------------
def _make_loss_call(B, D, lambda_param):
    lam = float(lambda_param)
    inv_b = 1.0 / float(B)
    inv_bm1 = 1.0 / float(B - 1)        # unbiased std, matching torch.std(0)

    def loss_kernel(z1t_ref, z2_ref, o_ref):
        z1t = z1t_ref[...].astype(jnp.float32)      # (D, B), pre-transposed lhs
        z2 = z2_ref[...].astype(jnp.float32)        # (B, D)

        # Per-feature batch normalization: (z - mean) / std (unbiased).
        mu1 = jnp.mean(z1t, axis=1, keepdims=True)                  # (D, 1)
        zc1 = z1t - mu1
        var1 = jnp.sum(zc1 * zc1, axis=1, keepdims=True) * inv_bm1
        z1n_t = zc1 * lax.rsqrt(var1)                               # (D, B)

        mu2 = jnp.mean(z2, axis=0, keepdims=True)                   # (1, D)
        zc2 = z2 - mu2
        var2 = jnp.sum(zc2 * zc2, axis=0, keepdims=True) * inv_bm1
        z2n = zc2 * lax.rsqrt(var2)                                 # (B, D)

        # Cross-correlation on the MXU: C = z1n^T @ z2n / B  -> (D, D)
        c = jnp.dot(z1n_t, z2n, preferred_element_type=jnp.float32) * inv_b

        row = lax.broadcasted_iota(jnp.int32, (D, D), 0)
        col = lax.broadcasted_iota(jnp.int32, (D, D), 1)
        is_diag = row == col
        on_diag = jnp.sum(jnp.where(is_diag, (c - 1.0) * (c - 1.0), 0.0))
        off_diag = jnp.sum(jnp.where(is_diag, 0.0, c * c))
        o_ref[0, 0] = on_diag + lam * off_diag

    vmem = pl.BlockSpec(memory_space=pltpu.MemorySpace.VMEM)
    flops = 2 * B * D * D + 12 * B * D + 6 * D * D
    bytes_accessed = 2 * B * D * 4 + 4
    return pl.pallas_call(
        loss_kernel,
        out_shape=jax.ShapeDtypeStruct((1, 1), jnp.float32),
        in_specs=[vmem, vmem],
        out_specs=pl.BlockSpec(memory_space=pltpu.MemorySpace.SMEM),
        cost_estimate=pl.CostEstimate(flops=flops, transcendentals=2 * D,
                                      bytes_accessed=bytes_accessed),
    )


def barlow_twins_loss(z1, z2, lambda_param=0.0051):
    """BarlowTwinsLoss(z1, z2) = invariance + lambda * redundancy."""
    assert z1.shape == z2.shape and z1.ndim == 2
    B, D = z1.shape
    # Layout plumbing: present the lhs as (D, B) so the in-kernel
    # cross-correlation is a plain (D,B)@(B,D) MXU matmul.
    z1t = jnp.transpose(z1)
    call = _make_loss_call(B, D, lambda_param)
    return call(z1t, z2)[0, 0]


# ---------------------------------------------------------------------------
# Plain-JAX references
# ---------------------------------------------------------------------------
_HP = jax.lax.Precision.HIGHEST


def _ref_forward(x, params):
    pooled = jnp.mean(x, axis=(2, 3))
    feats = jnp.dot(pooled, params["wbb"], precision=_HP) + params["bbb"]
    h = jnp.maximum(jnp.dot(feats, params["w1"], precision=_HP) + params["b1"],
                    0.0)
    z = jnp.dot(h, params["w2"], precision=_HP)
    return feats, z


def _ref_barlow_twins_loss(z1, z2, lam):
    B = z1.shape[0]

    def bn(z):
        zc = z - jnp.mean(z, axis=0, keepdims=True)
        std = jnp.sqrt(jnp.sum(zc * zc, axis=0, keepdims=True) / (B - 1))
        return zc / std

    c = jnp.dot(bn(z1).T, bn(z2), precision=_HP) / B
    d = jnp.diagonal(c)
    on = jnp.sum((d - 1.0) ** 2)
    off = jnp.sum(c * c) - jnp.sum(d * d)
    return on + lam * off


if __name__ == "__main__":
    key = jax.random.PRNGKey(0)
    kx1, kx2, kwb, kbb, kw1, kb1, kw2 = jax.random.split(key, 7)

    # Small shapes consistent with the module: two NCHW views, resnet-ish
    # feature dim, BarlowTwins projection head.
    B, C, H, W = 8, 4, 16, 16
    F, Hd, D = 32, 64, 128
    lambda_param = 0.0051

    x1 = jax.random.normal(kx1, (B, C, H, W), jnp.float32)
    x2 = jax.random.normal(kx2, (B, C, H, W), jnp.float32)
    params = {
        "wbb": jax.random.normal(kwb, (C, F), jnp.float32) * 0.5,
        "bbb": jax.random.normal(kbb, (1, F), jnp.float32) * 0.1,
        "w1": jax.random.normal(kw1, (F, Hd), jnp.float32) * 0.5,
        "b1": jax.random.normal(kb1, (1, Hd), jnp.float32) * 0.1,
        "w2": jax.random.normal(kw2, (Hd, D), jnp.float32) * 0.5,
    }

    # Training-mode forward (two augmented views) + BarlowTwins loss.
    z1 = barlow_twins_forward(x1, params, training=True)
    z2 = barlow_twins_forward(x2, params, training=True)
    loss = barlow_twins_loss(z1, z2, lambda_param)
    # Eval-mode forward: backbone features only.
    f1 = barlow_twins_forward(x1, params, training=False)
    jax.block_until_ready((z1, z2, f1, loss))

    # Reference check.
    rf1, rz1 = _ref_forward(x1, params)
    _, rz2 = _ref_forward(x2, params)
    rloss = _ref_barlow_twins_loss(rz1, rz2, lambda_param)

    assert jnp.allclose(z1, rz1, rtol=1e-3, atol=1e-3), "projection mismatch"
    assert jnp.allclose(f1, rf1, rtol=1e-3, atol=1e-3), "features mismatch"
    assert jnp.allclose(loss, rloss, rtol=1e-2, atol=1e-2), (loss, rloss)

    print("KERNEL_OK")
</pallas_src>

<mosaic_0001>
module attributes {stable_mosaic.version = 11 : i64} {
  func.func @_forward_kernel(%arg0: memref<8x4x256xf32, #tpu.memory_space<vmem>>, %arg1: memref<4x32xf32, #tpu.memory_space<vmem>>, %arg2: memref<1x32xf32, #tpu.memory_space<vmem>>, %arg3: memref<32x64xf32, #tpu.memory_space<vmem>>, %arg4: memref<1x64xf32, #tpu.memory_space<vmem>>, %arg5: memref<64x128xf32, #tpu.memory_space<vmem>>, %arg6: memref<8x32xf32, #tpu.memory_space<vmem>>, %arg7: memref<8x128xf32, #tpu.memory_space<vmem>>) attributes {dimension_semantics = [], scalar_prefetch = 0 : i64, scratch_operands = 0 : i64, tpu.core_type = #tpu.core_type<tc>} {
    %c0 = arith.constant 0 : index
    %c0_0 = arith.constant 0 : index
    %c0_1 = arith.constant 0 : index
    %0 = vector.load %arg0[%c0, %c0_0, %c0_1] : memref<8x4x256xf32, #tpu.memory_space<vmem>>, vector<8x4x256xf32>
    %cst = arith.constant dense<0.000000e+00> : vector<8x4xf32>
    %1 = vector.multi_reduction <add>, %0, %cst [2] : vector<8x4x256xf32> to vector<8x4xf32>
    %cst_2 = arith.constant 2.560000e+02 : f32
    %2 = vector.broadcast %cst_2 : f32 to vector<8x4xf32>
    %3 = arith.divf %1, %2 : vector<8x4xf32>
    %c0_3 = arith.constant 0 : index
    %c0_4 = arith.constant 0 : index
    %4 = vector.load %arg1[%c0_3, %c0_4] : memref<4x32xf32, #tpu.memory_space<vmem>>, vector<4x32xf32>
    %cst_5 = arith.constant dense<0.000000e+00> : vector<8x32xf32>
    %5 = tpu.matmul %3, %4, %cst_5 {dimension_numbers = #tpu.dot_dimension_numbers<[1], [0], [0], [1], [0, 0, 1, 1], [], []>} : vector<8x4xf32>, vector<4x32xf32>, vector<8x32xf32> -> vector<8x32xf32>
    %c0_6 = arith.constant 0 : index
    %c0_7 = arith.constant 0 : index
    %6 = vector.load %arg2[%c0_6, %c0_7] : memref<1x32xf32, #tpu.memory_space<vmem>>, vector<1x32xf32>
    %7 = vector.broadcast %6 : vector<1x32xf32> to vector<8x32xf32>
    %8 = arith.addf %5, %7 : vector<8x32xf32>
    %c0_8 = arith.constant 0 : index
    %c0_9 = arith.constant 0 : index
    %9 = vector.load %arg6[%c0_8, %c0_9] : memref<8x32xf32, #tpu.memory_space<vmem>>, vector<8x32xf32>
    tpu.vector_store %arg6[%c0_8, %c0_9], %8 {strides = array<i32>} : memref<8x32xf32, #tpu.memory_space<vmem>>, vector<8x32xf32>,
    %c0_10 = arith.constant 0 : index
    %c0_11 = arith.constant 0 : index
    %10 = vector.load %arg3[%c0_10, %c0_11] : memref<32x64xf32, #tpu.memory_space<vmem>>, vector<32x64xf32>
    %cst_12 = arith.constant dense<0.000000e+00> : vector<8x64xf32>
    %11 = tpu.matmul %8, %10, %cst_12 {dimension_numbers = #tpu.dot_dimension_numbers<[1], [0], [0], [1], [0, 0, 1, 1], [], []>} : vector<8x32xf32>, vector<32x64xf32>, vector<8x64xf32> -> vector<8x64xf32>
    %c0_13 = arith.constant 0 : index
    %c0_14 = arith.constant 0 : index
    %12 = vector.load %arg4[%c0_13, %c0_14] : memref<1x64xf32, #tpu.memory_space<vmem>>, vector<1x64xf32>
    %13 = vector.broadcast %12 : vector<1x64xf32> to vector<8x64xf32>
    %14 = arith.addf %11, %13 : vector<8x64xf32>
    %cst_15 = arith.constant 0.000000e+00 : f32
    %15 = vector.broadcast %cst_15 : f32 to vector<8x64xf32>
    %16 = arith.maximumf %14, %15 : vector<8x64xf32>
    %c0_16 = arith.constant 0 : index
    %c0_17 = arith.constant 0 : index
    %17 = vector.load %arg5[%c0_16, %c0_17] : memref<64x128xf32, #tpu.memory_space<vmem>>, vector<64x128xf32>
    %cst_18 = arith.constant dense<0.000000e+00> : vector<8x128xf32>
    %18 = tpu.matmul %16, %17, %cst_18 {dimension_numbers = #tpu.dot_dimension_numbers<[1], [0], [0], [1], [0, 0, 1, 1], [], []>} : vector<8x64xf32>, vector<64x128xf32>, vector<8x128xf32> -> vector<8x128xf32>
    %c0_19 = arith.constant 0 : index
    %c0_20 = arith.constant 0 : index
    %19 = vector.load %arg7[%c0_19, %c0_20] : memref<8x128xf32, #tpu.memory_space<vmem>>, vector<8x128xf32>
    tpu.vector_store %arg7[%c0_19, %c0_20], %18 {strides = array<i32>} : memref<8x128xf32, #tpu.memory_space<vmem>>, vector<8x128xf32>,
    return
  }
}

</mosaic_0001>

<bundles_post_ra>
// kernel: tpu_custom_call.1
= control target key start
LH: loop header
LB: loop body
LE: loop exit
PB: predicated region body
PF: predicated region fallthrough
CT: control target
= control target key end

     0   :  { %13 = vsyncpa [#allocation3], 0  ;;  %s629_s0 = inlined_call_operand.hbm [shape: f32[8,4,256], index: 0, kind: input, shape index: {}]   ;;  %s630_s1 = inlined_call_operand.hbm [shape: f32[4,32], index: 1, kind: input, shape index: {}]   ;;  %s631_s2 = inlined_call_operand.vmem [shape: f32[1,32], index: 2, kind: input, shape index: {}]   ;;  %s632_s3 = inlined_call_operand.hbm [shape: f32[32,64], index: 3, kind: input, shape index: {}]   ;;  %s633_s4 = inlined_call_operand.vmem [shape: f32[1,64], index: 4, kind: input, shape index: {}]   ;;  %s634_s5 = inlined_call_operand.hbm [shape: f32[64,128], index: 5, kind: input, shape index: {}]   ;;  %s635_s6 = inlined_call_operand.hbm [shape: f32[8,32], index: 6, kind: output, shape index: {0}]   ;;  %s636_s7 = inlined_call_operand.hbm [shape: f32[8,128], index: 7, kind: output, shape index: {1}]  }
   0x1   :  { %14 = vsyncpa [#allocation6], 0 }
   0x2   :  { %15 = vsyncpa [#allocation9], 0 }
   0x3   :  { %16 = vsyncpa [#allocation4], 0  ;;  %s36_s26 = sshll.u32 %s630_s1, 4  ;;  %s37_s26 = int_to_ptr.hbm [resolvable:$true] %s36_s26 }
   0x4   :  { %17 = vsyncpa [#allocation12], 0  ;;  %s539_s27 = smov [#allocation5]   ;;  %s22_s8 = sshll.u32 %s629_s0, 4  ;;  %s23_s8 = int_to_ptr.hbm [resolvable:$true] %s22_s8 }
   0x5   :  { %s38_s28 = sshll.u32 %s539_s27, 4  ;;  %s540_s9 = smov [#allocation2]   ;;  %s39_s28 = int_to_ptr.vmem [resolvable:$true] %s38_s28 }
   0x6   :  { %41 = dma.hbm_to_vmem [thread:$0]  %s37_s26, 64, %s39_s28, [#allocation6]  }
   0x7   :  { %s24_s10 = sshll.u32 %s540_s9, 4  ;;  %s541_s11 = smov 128   ;;  %s25_s10 = int_to_ptr.vmem [resolvable:$true] %s24_s10 }
   0x8   :  { %s542_s12 = smov 8   ;;  %s48_s1 = sshll.u32 %s632_s3, 4  ;;  %s49_s1 = int_to_ptr.hbm [resolvable:$true] %s48_s1 }
   0x9   :  { %30 = dma.hbm_to_vmem [thread:$0]  %s23_s8, 1024, %s25_s10, [#allocation3], %s541_s11, %s541_s11, %s542_s12  }
   0xa   :  { %s543_s15 = smov [#allocation7]   ;;  %s63_s0 = sshll.u32 %s634_s5, 4  ;;  %s64_s0 = int_to_ptr.hbm [resolvable:$true] %s63_s0 }
   0xb   :  { %s50_s16 = sshll.u32 %s543_s15, 4  ;;  %s544_s19 = smov [#allocation8]   ;;  %s51_s16 = int_to_ptr.vmem [resolvable:$true] %s50_s16 }
   0xc   :  { %56 = dma.hbm_to_vmem [thread:$0]  %s49_s1, 512, %s51_s16, [#allocation6], %s541_s11, %s541_s11, %s542_s12  }
   0xd   :  { %s65_s20 = sshll.u32 %s544_s19, 4  ;;  %s66_s20 = int_to_ptr.vmem [resolvable:$true] %s65_s20 }
   0xe   :  { %71 = dma.hbm_to_vmem [thread:$0]  %s64_s0, 1024, %s66_s20, [#allocation9], %s541_s11, %s541_s11, %s542_s12  }
   0xf   :  { %529 = dma.done.wait [#allocation3], 1024  }
  0x10   :  { %530 = vsyncadd [#allocation3], 4294966272 }
  0x11   :  { %531 = dma.done.wait [#allocation6], 576  }
  0x12   :  { %532 = vsyncadd [#allocation6], 4294966720 }
  0x13   :  { %533 = dma.done.wait [#allocation9], 1024  }
  0x14   :  { %534 = vsyncadd [#allocation9], 4294966272  ;;  %v88_v0 = vld [vmem:[#allocation2] sm:$0xff]  ;;  %v90_v1 = vld [vmem:[#allocation2 + $0x10] sm:$0xff]  ;;  %vm147_vm0 = vcmask 1043456   ;;  %v545_v48 = vmov 256.0   ;;  %v216_v59 = vlaneseq }
  0x15   :  { %104 = vst [vmem:[#allocation1] ss:$2 sm:$0xff] %v88_v0  ;;  %v89_v2 = vld [vmem:[#allocation2 + $0x8] sm:$0xff]  ;;  %v91_v3 = vld [vmem:[#allocation2 + $0x18] sm:$0xff]  ;;  %v92_v4 = vld [vmem:[#allocation2 + $0x20] sm:$0xff]  ;;  %383 = vrcp.f32 %v545_v48  ;;  %vm226_vm2 = vcmask 1041409  }
  0x16   :  { %112 = vst [vmem:[#allocation1 + $0x20] ss:$2 sm:$0xff] %v90_v1  ;;  %v94_v5 = vld [vmem:[#allocation2 + $0x30] sm:$0xff]  ;;  %v93_v10 = vld [vmem:[#allocation2 + $0x28] sm:$0xff]  ;;  %v95_v16 = vld [vmem:[#allocation2 + $0x38] sm:$0xff]  ;;  %v217_v61 = vand.u32 127, %v216_v59 }
  0x17   :  { %108 = vst [vmem:[#allocation1 + $0x10] ss:$2 sm:$0xff] %v89_v2  ;;  %v203_v51 = vld [vmem:[#allocation5] sm:$0xf]  ;;  %v270_v54 = vld [vmem:[#allocation7 + $0x10] sm:$0xff]  ;;  %vm228_vm3 = vcmask 1042434  }
  0x18   :  { %116 = vst [vmem:[#allocation1 + $0x30] ss:$2 sm:$0xff] %v91_v3  ;;  %368 = vmatpush.msk.msra.mxu0 %vm147_vm0, %v203_v51  ;;  %v271_v53 = vld [vmem:[#allocation7 + $0x18] sm:$0xff]  ;;  %vm230_vm4 = vcmask 1043459   ;;  %vm232_vm5 = vcmask 1044484   ;;  %vm234_vm6 = vcmask 1045509  }
  0x19   :  { %291 = vmatpush.msra.mxu1 %v271_v53  ;;  %vm236_vm7 = vcmask 1046534   ;;  %vm238_vm8 = vcmask 1047559   ;;  %vm240_vm9 = vcmask 31744   ;;  %vm266_vm10 = vcmask 261120   ;;  %s340_s26 = sshll.u32 %s635_s6, 4  ;;  %s547_s27 = smov [#allocation11]   ;;  %s341_s26 = int_to_ptr.hbm [resolvable:$true] %s340_s26 }
  0x1a   :  { %vm308_vm11 = vcmask 523264   ;;  %s349_s28 = sshll.u32 %s547_s27, 4  ;;  %s350_s28 = int_to_ptr.vmem [resolvable:$true] %s349_s28 }
  0x1b   :  { %v384_v49 = vpop.eup %383  ;;  %292 = vmatpush.msra.mxu1 %v270_v54 }
  0x1c   :  { %v105_v6 = vld.sshfl [vmem:[#allocation1] sm:$0xff pattern:$0x75316420]  ;;  %v106_v7 = vld.sshfl [vmem:[#allocation1 + $0x8] sm:$0xff pattern:$0x75316420]  ;;  %vm193_vm1 = vweird.f32 %v384_v49 }
  0x1d   :  { %v148_v8 = vsel %vm147_vm0, %v105_v6, 0.0  ;;  %v149_v9 = vsel %vm147_vm0, %v106_v7, 0.0  ;;  %119 = vst [vmem:[#allocation1] ss:$2 sm:$0xff] %v92_v4  ;;  %v189_v50 = vmul.f32 256.0, %v384_v49 }
  0x1e   :  { %v150_v11 = vadd.f32 %v149_v9, %v148_v8  ;;  %v113_v12 = vld.sshfl [vmem:[#allocation1 + $0x20] sm:$0xff pattern:$0x75316420]  ;;  %v114_v13 = vld.sshfl [vmem:[#allocation1 + $0x28] sm:$0xff pattern:$0x75316420] }
  0x1f   :  { %v158_v14 = vsel %vm147_vm0, %v113_v12, 0.0  ;;  %v159_v15 = vsel %vm147_vm0, %v114_v13, 0.0  ;;  %125 = vst [vmem:[#allocation1 + $0x20] ss:$2 sm:$0xff] %v94_v5  ;;  %v190_v52 = vsub.f32 1.0, %v189_v50 }
  0x20   :  { %151 = vadd.xlane.f32.xlu0 %v150_v11  ;;  %v160_v17 = vadd.f32 %v159_v15, %v158_v14  ;;  %v109_v18 = vld.sshfl [vmem:[#allocation1 + $0x10] sm:$0xff pattern:$0x75316420]  ;;  %v110_v19 = vld.sshfl [vmem:[#allocation1 + $0x18] sm:$0xff pattern:$0x75316420] }
  0x21   :  { %122 = vst [vmem:[#allocation1 + $0x10] ss:$2 sm:$0xff] %v93_v10  ;;  %v153_v20 = vsel %vm147_vm0, %v109_v18, 0.0  ;;  %v154_v21 = vsel %vm147_vm0, %v110_v19, 0.0  ;;  %v191_v55 = vmul.f32 %v384_v49, %v190_v52 }
  0x22   :  { %161 = vadd.xlane.f32.xlu1 %v160_v17  ;;  %v117_v22 = vld.sshfl [vmem:[#allocation1 + $0x30] sm:$0xff pattern:$0x75316420]  ;;  %v118_v23 = vld.sshfl [vmem:[#allocation1 + $0x38] sm:$0xff pattern:$0x75316420]  ;;  %v155_v26 = vadd.f32 %v154_v21, %v153_v20 }
  0x23   :  { %128 = vst [vmem:[#allocation1 + $0x30] ss:$2 sm:$0xff] %v95_v16  ;;  %v163_v24 = vsel %vm147_vm0, %v117_v22, 0.0  ;;  %v164_v25 = vsel %vm147_vm0, %v118_v23, 0.0  ;;  %v192_v56 = vadd.f32 %v384_v49, %v191_v55 }
  0x24   :  { %v120_v27 = vld.sshfl [vmem:[#allocation1] sm:$0xff pattern:$0x75316420]  ;;  %v121_v28 = vld.sshfl [vmem:[#allocation1 + $0x8] sm:$0xff pattern:$0x75316420]  ;;  %v165_v32 = vadd.f32 %v164_v25, %v163_v24 }
  0x25   :  { %v168_v29 = vsel %vm147_vm0, %v120_v27, 0.0  ;;  %v169_v30 = vsel %vm147_vm0, %v121_v28, 0.0  ;;  %v194_v60 = vsel %vm193_vm1, %v384_v49, %v192_v56  ;;  %v269_v27 = vld [vmem:[#allocation7 + $0x8] sm:$0xff]  ;;  %v268_v28 = vld [vmem:[#allocation7] sm:$0xff] }
  0x26   :  { %v170_v31 = vadd.f32 %v169_v30, %v168_v29  ;;  %v126_v33 = vld.sshfl [vmem:[#allocation1 + $0x20] sm:$0xff pattern:$0x75316420]  ;;  %v127_v34 = vld.sshfl [vmem:[#allocation1 + $0x28] sm:$0xff pattern:$0x75316420]  ;;  %293 = vmatpush.msra.mxu1 %v269_v27 }
  0x27   :  { %v178_v39 = vsel %vm147_vm0, %v126_v33, 0.0  ;;  %v179_v40 = vsel %vm147_vm0, %v127_v34, 0.0  ;;  %v307_v29 = vld [vmem:[#allocation8 + $0x38] sm:$0xff]  ;;  %v306_v30 = vld [vmem:[#allocation8 + $0x30] sm:$0xff] }
  0x28   :  { %156 = vadd.xlane.f32.xlu0 %v155_v26  ;;  %171 = vadd.xlane.f32.xlu2 %v170_v31  ;;  %v123_v35 = vld.sshfl [vmem:[#allocation1 + $0x10] sm:$0xff pattern:$0x75316420]  ;;  %v124_v36 = vld.sshfl [vmem:[#allocation1 + $0x18] sm:$0xff pattern:$0x75316420]  ;;  %v180_v46 = vadd.f32 %v179_v40, %v178_v39 }
  0x29   :  { %v173_v37 = vsel %vm147_vm0, %v123_v35, 0.0  ;;  %v174_v38 = vsel %vm147_vm0, %v124_v36, 0.0  ;;  %294 = vmatpush.msra.mxu1 %v268_v28  ;;  %320 = vmatpush.msra.mxu2 %v307_v29  ;;  %v305_v31 = vld [vmem:[#allocation8 + $0x28] sm:$0xff]  ;;  %v303_v33 = vld [vmem:[#allocation8 + $0x18] sm:$0xff]  ;;  %v381_v34 = vld [vmem:[%s631_s2] ss:$0 sm:$0xff] }
  0x2a   :  { %166 = vadd.xlane.f32.xlu1 %v165_v32  ;;  %v129_v41 = vld.sshfl [vmem:[#allocation1 + $0x30] sm:$0xff pattern:$0x75316420]  ;;  %v130_v42 = vld.sshfl [vmem:[#allocation1 + $0x38] sm:$0xff pattern:$0x75316420]  ;;  %v175_v45 = vadd.f32 %v174_v38, %v173_v37 }
  0x2b   :  { %v183_v43 = vsel %vm147_vm0, %v129_v41, 0.0  ;;  %v184_v44 = vsel %vm147_vm0, %v130_v42, 0.0  ;;  %321 = vmatpush.msra.mxu2 %v306_v30  ;;  %v304_v32 = vld [vmem:[#allocation8 + $0x20] sm:$0xff]  ;;  %v302_v37 = vld [vmem:[#allocation8 + $0x10] sm:$0xff]  ;;  %v301_v38 = vld [vmem:[#allocation8 + $0x8] sm:$0xff]  ;;  %s546_s2 = smov [#allocation10]  }
  0x2c   :  { %v185_v47 = vadd.f32 %v184_v44, %v183_v43  ;;  %v300_v39 = vld [vmem:[#allocation8] sm:$0xff]  ;;  %v382_v40 = vld [vmem:[%s633_s4] ss:$0 sm:$0xff]  ;;  %s338_s23 = sshll.u32 %s546_s2, 4  ;;  %s351_s4 = sshll.u32 %s636_s7, 4  ;;  %s339_s23 = int_to_ptr.vmem [resolvable:$true] %s338_s23  ;;  %s352_s4 = int_to_ptr.hbm [resolvable:$true] %s351_s4 }
  0x2d   :  { %322 = vmatpush.msra.mxu2 %v305_v31 }
  0x2f   :  { %323 = vmatpush.msra.mxu2 %v304_v32 }
  0x30   :  { %176 = vadd.xlane.f32.xlu2 %v175_v45  ;;  %181 = vadd.xlane.f32.xlu0 %v180_v46 }
  0x31   :  { %324 = vmatpush.msra.mxu2 %v303_v33 }
  0x32   :  { %186 = vadd.xlane.f32.xlu1 %v185_v47 }
  0x33   :  { %325 = vmatpush.msra.mxu2 %v302_v37 }
  0x35   :  { %326 = vmatpush.msra.mxu2 %v301_v38 }
  0x37   :  { %327 = vmatpush.msra.mxu2 %v300_v39 }
  0x93   :  { %v152_v57 = vpop.xlane.xlu0 %151 }
  0x94   :  { %v195_v62 = vmul.f32 %v194_v60, %v152_v57 }
  0x95   :  { %v162_v58 = vpop.xlane.xlu1 %161 }
  0x96   :  { %v197_v63 = vmul.f32 %v194_v60, %v162_v58  ;;  %v218_v4 = vperm.slane %v195_v62, %v217_v61 }
  0x98   :  { %v220_v7 = vperm.slane %v197_v63, %v217_v61 }
  0x9b   :  { %v157_v0 = vpop.xlane.xlu0 %156  ;;  %v172_v1 = vpop.xlane.xlu2 %171 }
  0x9c   :  { %v196_v2 = vmul.f32 %v194_v60, %v157_v0  ;;  %v199_v10 = vmul.f32 %v194_v60, %v172_v1 }
  0x9d   :  { %v167_v3 = vpop.xlane.xlu1 %166 }
  0x9e   :  { %v219_v5 = vperm.slane %v196_v2, %v217_v61  ;;  %v198_v6 = vmul.f32 %v194_v60, %v167_v3  ;;  %v222_v17 = vperm.slane %v199_v10, %v217_v61 }
  0xa0   :  { %v227_v8 = vsel %vm226_vm2, %v219_v5, %v218_v4  ;;  %v221_v9 = vperm.slane %v198_v6, %v217_v61 }
  0xa1   :  { %v229_v11 = vsel %vm228_vm3, %v220_v7, %v227_v8 }
  0xa2   :  { %v231_v14 = vsel %vm230_vm4, %v221_v9, %v229_v11 }
  0xa3   :  { %v177_v12 = vpop.xlane.xlu2 %176  ;;  %v182_v13 = vpop.xlane.xlu0 %181  ;;  %v233_v22 = vsel %vm232_vm5, %v222_v17, %v231_v14 }
  0xa4   :  { %v200_v15 = vmul.f32 %v194_v60, %v177_v12  ;;  %v201_v16 = vmul.f32 %v194_v60, %v182_v13 }
  0xa5   :  { %v187_v18 = vpop.xlane.xlu1 %186 }
  0xa6   :  { %v223_v19 = vperm.slane %v200_v15, %v217_v61  ;;  %v224_v20 = vperm.slane %v201_v16, %v217_v61  ;;  %v202_v21 = vmul.f32 %v194_v60, %v187_v18 }
  0xa8   :  { %v225_v23 = vperm.slane %v202_v21, %v217_v61  ;;  %v235_v24 = vsel %vm234_vm6, %v223_v19, %v233_v22 }
  0xa9   :  { %v237_v25 = vsel %vm236_vm7, %v224_v20, %v235_v24 }
  0xaa   :  { %v239_v26 = vsel %vm238_vm8, %v225_v23, %v237_v25 }
  0xab   :  { %369 = vmatmul.msk.f32.vlgmr.msra.gmra.mxu0 %vm240_vm9, %v239_v26 }
 0x128   :  { %v263_v35 = vpop.f32.mrf.mxu0 }
 0x129   :  { %v264_v36 = vadd.f32 %v381_v34, %v263_v35 }
 0x12b   :  { %370 = vmatmul.msk.f32.vlgmr.msra.gmra.mxu1 %vm266_vm10, %v264_v36  ;;  %267 = vst.msk [vmem:[#allocation10] sm:$0xff] %vm266_vm10, %v264_v36 }
 0x12c   :  { %343 = dma.vmem_to_hbm [thread:$0]  %s339_s23, 128, %s341_s26, [#allocation4]  }
 0x1a8   :  { %v296_v41 = vpop.f32.mrf.mxu1 }
 0x1a9   :  { %v297_v42 = vadd.f32 %v382_v40, %v296_v41 }
 0x1ab   :  { %v299_v43 = vmax.f32 %v297_v42, 0.0 }
 0x1ad   :  { %371 = vmatmul.msk.f32.vlgmr.msra.gmra.mxu2 %vm308_vm11, %v299_v43 }
 0x230   :  { %v329_v44 = vpop.f32.mrf.mxu2 }
 0x231   :  { %332 = vst [vmem:[#allocation11] sm:$0xff] %v329_v44 }
 0x232   :  { %354 = dma.vmem_to_hbm [thread:$0]  %s350_s28, 128, %s352_s4, [#allocation12]  }
 0x233   :  { %535 = dma.done.wait [#allocation4], 128  }
 0x234   :  { %536 = vsyncadd [#allocation4], 4294967168 }
 0x235   :  { %537 = dma.done.wait [#allocation12], 128  }
 0x236   :  { %538 = vsyncadd [#allocation12], 4294967168 }
 0x237   :  { %363 = vsyncpa [#allocation3], 1 }
 0x238   :  { %364 = vsyncpa [#allocation6], 1 }
 0x239   :  { %365 = vsyncpa [#allocation9], 1 }
 0x23a   :  { %366 = vsyncpa [#allocation4], 1 }
 0x23b   :  { %367 = vsyncpa [#allocation12], 1 }

</bundles_post_ra>
